<compile_context>
chip_gen: v7x
topology: tpu7x:2x2x1
jax: 0.10.0
libtpu: 0.0.40
codegen_flags: <defaults>
</compile_context>

<pallas_src>
import jax
import jax.numpy as jnp
from jax.experimental import pallas as pl
from jax.experimental.pallas import tpu as pltpu

LAYER_DIMS = [(36, 128), (128, 64), (64, 16), (16, 3), (3, 20)]
IN_DIM = LAYER_DIMS[0][0]
OUT_DIM = LAYER_DIMS[-1][1]
NUM_MXU_LAYERS = 3   # fc1, fc2, fc3 on the MXU; fc4, fc5 on the VPU


def mlp_kernel(x_ref,
               w1_ref, b1_ref,
               w2_ref, b2_ref,
               w3_ref, b3_ref,
               w4_ref, b4_ref,
               w5_ref, b5_ref,
               o_ref):
    """Batch-on-lanes MLP: every activation is (features, TB), TB on lanes."""
    tb = x_ref.shape[-1]

    def mxu_dense(w_ref, h_bf16, b_ref):
        # (N, K)bf16 @ (K, TB)bf16 on the MXU, f32 accumulation, (N, 1) f32 bias.
        return jnp.dot(w_ref[...], h_bf16,
                       preferred_element_type=jnp.float32) + b_ref[...]

    def vpu_dense(w_ref, h, b_ref):
        # Tiny layer off the MXU: unrolled f32 broadcast-FMA on the VPU.
        #   out[n, :] = b[n] + sum_k W[n, k] * h[k, :]
        n_out, k_in = w_ref.shape
        acc = jnp.zeros((n_out, tb), jnp.float32)
        for k in range(k_in):
            acc = acc + w_ref[:, k:k + 1] * h[k:k + 1, :]
        return acc + b_ref[...]

    h = jnp.maximum(mxu_dense(w1_ref, x_ref[...], b1_ref), 0.0)              # (128, TB)
    h = jnp.maximum(mxu_dense(w2_ref, h.astype(jnp.bfloat16), b2_ref), 0.0)  # (64, TB)
    h = jnp.maximum(mxu_dense(w3_ref, h.astype(jnp.bfloat16), b3_ref), 0.0)  # (16, TB)
    h = jnp.maximum(vpu_dense(w4_ref, h, b4_ref), 0.0)                       # (3, TB)
    z = vpu_dense(w5_ref, h, b5_ref)                                         # (20, TB)

    # log_softmax over the feature axis (PyTorch dim=1) = axis 0 here (XLU reduces).
    m = jnp.max(z, axis=0, keepdims=True)
    s = z - m
    lse = jnp.log(jnp.sum(jnp.exp(s), axis=0, keepdims=True))
    o_ref[...] = s - lse


def _round_up(n, m):
    return ((n + m - 1) // m) * m


def _pick_batch_tile(batch, tb_max, min_steps):
    """Lane-aligned (x128) batch tile targeting >= min_steps grid steps."""
    bp = _round_up(batch, 128)
    tb = _round_up(max(1, -(-bp // min_steps)), 128)
    return max(128, min(tb, tb_max))


def prepare_params(params):
    """One-time prep: W (in,out) -> (out,in) [bf16 for MXU layers, f32 for VPU
    layers]; b -> (out, 1) f32 column (lane-broadcast bias)."""
    prepped = []
    for idx, (W, b) in enumerate(params):
        fan_in, fan_out = W.shape
        wt = jnp.asarray(W).T
        wt = wt.astype(jnp.bfloat16 if idx < NUM_MXU_LAYERS else jnp.float32)
        prepped.append(
            (wt, jnp.asarray(b).reshape(fan_out, 1).astype(jnp.float32)))
    return prepped


def net_forward(x, prepared_params, *, tb_max=4096, min_steps=4):
    """x: (B, 36). prepared_params: output of prepare_params(). -> (B, 20) f32."""
    B = x.shape[0]
    TB = _pick_batch_tile(B, tb_max, min_steps)
    Bp = _round_up(B, TB)

    # Batch-on-lanes layout plumbing, done once in the wrapper: (36, Bp) bf16 in,
    # (20, Bp) f32 out.  Padded batch columns are computed and sliced off.
    xt = jnp.asarray(x).astype(jnp.bfloat16).T
    if Bp != B:
        xt = jnp.pad(xt, ((0, 0), (0, Bp - B)))

    flat_inputs = [xt]
    in_specs = [pl.BlockSpec((IN_DIM, TB), lambda i: (0, i))]
    for W, b in prepared_params:
        flat_inputs += [W, b]
        # Full-shape blocks + constant index maps -> resident in VMEM, not re-DMA'd.
        in_specs += [pl.BlockSpec(W.shape, lambda i: (0, 0)),
                     pl.BlockSpec(b.shape, lambda i: (0, 0))]

    out_t = pl.pallas_call(
        mlp_kernel,
        out_shape=jax.ShapeDtypeStruct((OUT_DIM, Bp), jnp.float32),
        grid=(Bp // TB,),
        in_specs=in_specs,
        out_specs=pl.BlockSpec((OUT_DIM, TB), lambda i: (0, i)),
        compiler_params=pltpu.CompilerParams(
            dimension_semantics=("parallel",)),
    )(*flat_inputs)

    out = out_t.T
    return out[:B] if Bp != B else out


def init_params(key):
    """Deterministic parameter init matching the PyTorch layer shapes.
    W stored as (in, out) so references use h @ W + b."""
    params = []
    for i, (fan_in, fan_out) in enumerate(LAYER_DIMS):
        kw, kb = jax.random.split(jax.random.fold_in(key, i))
        bound = 1.0 / jnp.sqrt(fan_in)
        W = jax.random.uniform(kw, (fan_in, fan_out), jnp.float32, -bound, bound)
        b = jax.random.uniform(kb, (fan_out,), jnp.float32, -bound, bound)
        params.append((W, b))
    return params


def reference_forward_f32(x, params):
    """Plain-JAX f32 reference (matches the PyTorch module exactly)."""
    h = x
    for i, (W, b) in enumerate(params):
        h = jnp.dot(h, W, precision=jax.lax.Precision.HIGHEST) + b
        if i < len(params) - 1:
            h = jnp.maximum(h, 0.0)
    return jax.nn.log_softmax(h, axis=1)


def reference_forward_mixed(x, params):
    """Plain-JAX reference mirroring the kernel numerics: bf16-operand / f32-accum
    matmuls for fc1-fc3, true-f32 math for fc4/fc5 and all element-wise ops."""
    h = x
    for i, (W, b) in enumerate(params):
        if i < NUM_MXU_LAYERS:
            h = jnp.dot(h.astype(jnp.bfloat16), W.astype(jnp.bfloat16),
                        preferred_element_type=jnp.float32) + b
        else:
            h = jnp.dot(h.astype(jnp.float32), W.astype(jnp.float32),
                        preferred_element_type=jnp.float32,
                        precision=jax.lax.Precision.HIGHEST) + b
        if i < len(params) - 1:
            h = jnp.maximum(h, 0.0)
    return jax.nn.log_softmax(h, axis=1)


if __name__ == "__main__":
    key = jax.random.PRNGKey(0)
    kx, kp = jax.random.split(key)

    params = init_params(kp)
    prepped = prepare_params(params)

    # Small single-tile batch and a multi-tile batch that exercises grid + padding.
    for B in (8, 300):
        x = jax.random.normal(jax.random.fold_in(kx, B), (B, IN_DIM),
                              dtype=jnp.float32)
        out = jax.block_until_ready(net_forward(x, prepped))
        assert out.shape == (B, OUT_DIM)

        # Tight check vs. a reference using the same mixed-precision path.
        ref_mixed = reference_forward_mixed(x, params)
        assert jnp.allclose(out, ref_mixed, atol=1e-3, rtol=1e-3), \
            float(jnp.max(jnp.abs(out - ref_mixed)))

        # Loose check vs. the exact f32 PyTorch-equivalent reference.
        ref_f32 = reference_forward_f32(x, params)
        assert jnp.allclose(out, ref_f32, atol=5e-2, rtol=5e-2)

    print("KERNEL_OK")
</pallas_src>

<mosaic_0001>
module attributes {stable_mosaic.version = 11 : i64} {
  func.func @mlp_kernel(%arg0: i32, %arg1: memref<36x128xbf16, #tpu.memory_space<vmem>>, %arg2: memref<128x36xbf16, #tpu.memory_space<vmem>>, %arg3: memref<128x1xf32, #tpu.memory_space<vmem>>, %arg4: memref<64x128xbf16, #tpu.memory_space<vmem>>, %arg5: memref<64x1xf32, #tpu.memory_space<vmem>>, %arg6: memref<16x64xbf16, #tpu.memory_space<vmem>>, %arg7: memref<16x1xf32, #tpu.memory_space<vmem>>, %arg8: memref<3x16xf32, #tpu.memory_space<vmem>>, %arg9: memref<3x1xf32, #tpu.memory_space<vmem>>, %arg10: memref<20x3xf32, #tpu.memory_space<vmem>>, %arg11: memref<20x1xf32, #tpu.memory_space<vmem>>, %arg12: memref<20x128xf32, #tpu.memory_space<vmem>>) attributes {dimension_semantics = [#tpu.dimension_semantics<parallel>], iteration_bounds = array<i64: 1>, scalar_prefetch = 0 : i64, scratch_operands = 0 : i64, tpu.core_type = #tpu.core_type<tc>, window_params = [{transform_indices = @transform_0, window_bounds = array<i64: 36, 128>}, {pipeline_mode = #tpu.pipeline_mode<synchronous>, transform_indices = @transform_1, window_bounds = array<i64: 128, 36>}, {pipeline_mode = #tpu.pipeline_mode<synchronous>, transform_indices = @transform_2, window_bounds = array<i64: 128, 1>}, {pipeline_mode = #tpu.pipeline_mode<synchronous>, transform_indices = @transform_3, window_bounds = array<i64: 64, 128>}, {pipeline_mode = #tpu.pipeline_mode<synchronous>, transform_indices = @transform_4, window_bounds = array<i64: 64, 1>}, {pipeline_mode = #tpu.pipeline_mode<synchronous>, transform_indices = @transform_5, window_bounds = array<i64: 16, 64>}, {pipeline_mode = #tpu.pipeline_mode<synchronous>, transform_indices = @transform_6, window_bounds = array<i64: 16, 1>}, {pipeline_mode = #tpu.pipeline_mode<synchronous>, transform_indices = @transform_7, window_bounds = array<i64: 3, 16>}, {pipeline_mode = #tpu.pipeline_mode<synchronous>, transform_indices = @transform_8, window_bounds = array<i64: 3, 1>}, {pipeline_mode = #tpu.pipeline_mode<synchronous>, transform_indices = @transform_9, window_bounds = array<i64: 20, 3>}, {pipeline_mode = #tpu.pipeline_mode<synchronous>, transform_indices = @transform_10, window_bounds = array<i64: 20, 1>}, {transform_indices = @transform_11, window_bounds = array<i64: 20, 128>}]} {
    %c0 = arith.constant 0 : index
    %c0_0 = arith.constant 0 : index
    %0 = vector.load %arg1[%c0, %c0_0] : memref<36x128xbf16, #tpu.memory_space<vmem>>, vector<36x128xbf16>
    %c0_1 = arith.constant 0 : index
    %c0_2 = arith.constant 0 : index
    %1 = vector.load %arg2[%c0_1, %c0_2] : memref<128x36xbf16, #tpu.memory_space<vmem>>, vector<128x36xbf16>
    %cst = arith.constant dense<0.000000e+00> : vector<128x128xf32>
    %2 = tpu.matmul %1, %0, %cst {dimension_numbers = #tpu.dot_dimension_numbers<[1], [0], [0], [1], [0, 0, 1, 1], [], []>} : vector<128x36xbf16>, vector<36x128xbf16>, vector<128x128xf32> -> vector<128x128xf32>
    %c0_3 = arith.constant 0 : index
    %c0_4 = arith.constant 0 : index
    %3 = vector.load %arg3[%c0_3, %c0_4] : memref<128x1xf32, #tpu.memory_space<vmem>>, vector<128x1xf32>
    %4 = vector.broadcast %3 : vector<128x1xf32> to vector<128x128xf32>
    %5 = arith.addf %2, %4 : vector<128x128xf32>
    %cst_5 = arith.constant 0.000000e+00 : f32
    %6 = vector.broadcast %cst_5 : f32 to vector<128x128xf32>
    %7 = arith.maximumf %5, %6 : vector<128x128xf32>
    %8 = arith.truncf %7 : vector<128x128xf32> to vector<128x128xbf16>
    %c0_6 = arith.constant 0 : index
    %c0_7 = arith.constant 0 : index
    %9 = vector.load %arg4[%c0_6, %c0_7] : memref<64x128xbf16, #tpu.memory_space<vmem>>, vector<64x128xbf16>
    %cst_8 = arith.constant dense<0.000000e+00> : vector<64x128xf32>
    %10 = tpu.matmul %9, %8, %cst_8 {dimension_numbers = #tpu.dot_dimension_numbers<[1], [0], [0], [1], [0, 0, 1, 1], [], []>} : vector<64x128xbf16>, vector<128x128xbf16>, vector<64x128xf32> -> vector<64x128xf32>
    %c0_9 = arith.constant 0 : index
    %c0_10 = arith.constant 0 : index
    %11 = vector.load %arg5[%c0_9, %c0_10] : memref<64x1xf32, #tpu.memory_space<vmem>>, vector<64x1xf32>
    %12 = vector.broadcast %11 : vector<64x1xf32> to vector<64x128xf32>
    %13 = arith.addf %10, %12 : vector<64x128xf32>
    %cst_11 = arith.constant 0.000000e+00 : f32
    %14 = vector.broadcast %cst_11 : f32 to vector<64x128xf32>
    %15 = arith.maximumf %13, %14 : vector<64x128xf32>
    %16 = arith.truncf %15 : vector<64x128xf32> to vector<64x128xbf16>
    %c0_12 = arith.constant 0 : index
    %c0_13 = arith.constant 0 : index
    %17 = vector.load %arg6[%c0_12, %c0_13] : memref<16x64xbf16, #tpu.memory_space<vmem>>, vector<16x64xbf16>
    %cst_14 = arith.constant dense<0.000000e+00> : vector<16x128xf32>
    %18 = tpu.matmul %17, %16, %cst_14 {dimension_numbers = #tpu.dot_dimension_numbers<[1], [0], [0], [1], [0, 0, 1, 1], [], []>} : vector<16x64xbf16>, vector<64x128xbf16>, vector<16x128xf32> -> vector<16x128xf32>
    %c0_15 = arith.constant 0 : index
    %c0_16 = arith.constant 0 : index
    %19 = vector.load %arg7[%c0_15, %c0_16] : memref<16x1xf32, #tpu.memory_space<vmem>>, vector<16x1xf32>
    %20 = vector.broadcast %19 : vector<16x1xf32> to vector<16x128xf32>
    %21 = arith.addf %18, %20 : vector<16x128xf32>
    %cst_17 = arith.constant 0.000000e+00 : f32
    %22 = vector.broadcast %cst_17 : f32 to vector<16x128xf32>
    %23 = arith.maximumf %21, %22 : vector<16x128xf32>
    %cst_18 = arith.constant 0.000000e+00 : f32
    %24 = vector.broadcast %cst_18 : f32 to vector<3x128xf32>
    %c0_19 = arith.constant 0 : index
    %c0_20 = arith.constant 0 : index
    %25 = vector.load %arg8[%c0_19, %c0_20] : memref<3x16xf32, #tpu.memory_space<vmem>>, vector<3x1xf32>
    %26 = vector.extract_strided_slice %23 {offsets = [0, 0], sizes = [1, 128], strides = [1, 1]} : vector<16x128xf32> to vector<1x128xf32>
    %27 = vector.broadcast %25 : vector<3x1xf32> to vector<3x128xf32>
    %28 = vector.broadcast %26 : vector<1x128xf32> to vector<3x128xf32>
    %29 = arith.mulf %27, %28 : vector<3x128xf32>
    %30 = arith.addf %24, %29 : vector<3x128xf32>
    %c0_21 = arith.constant 0 : index
    %c1 = arith.constant 1 : index
    %31 = vector.load %arg8[%c0_21, %c1] : memref<3x16xf32, #tpu.memory_space<vmem>>, vector<3x1xf32>
    %32 = vector.extract_strided_slice %23 {offsets = [1, 0], sizes = [1, 128], strides = [1, 1]} : vector<16x128xf32> to vector<1x128xf32>
    %33 = vector.broadcast %31 : vector<3x1xf32> to vector<3x128xf32>
    %34 = vector.broadcast %32 : vector<1x128xf32> to vector<3x128xf32>
    %35 = arith.mulf %33, %34 : vector<3x128xf32>
    %36 = arith.addf %30, %35 : vector<3x128xf32>
    %c0_22 = arith.constant 0 : index
    %c2 = arith.constant 2 : index
    %37 = vector.load %arg8[%c0_22, %c2] : memref<3x16xf32, #tpu.memory_space<vmem>>, vector<3x1xf32>
    %38 = vector.extract_strided_slice %23 {offsets = [2, 0], sizes = [1, 128], strides = [1, 1]} : vector<16x128xf32> to vector<1x128xf32>
    %39 = vector.broadcast %37 : vector<3x1xf32> to vector<3x128xf32>
    %40 = vector.broadcast %38 : vector<1x128xf32> to vector<3x128xf32>
    %41 = arith.mulf %39, %40 : vector<3x128xf32>
    %42 = arith.addf %36, %41 : vector<3x128xf32>
    %c0_23 = arith.constant 0 : index
    %c3 = arith.constant 3 : index
    %43 = vector.load %arg8[%c0_23, %c3] : memref<3x16xf32, #tpu.memory_space<vmem>>, vector<3x1xf32>
    %44 = vector.extract_strided_slice %23 {offsets = [3, 0], sizes = [1, 128], strides = [1, 1]} : vector<16x128xf32> to vector<1x128xf32>
    %45 = vector.broadcast %43 : vector<3x1xf32> to vector<3x128xf32>
    %46 = vector.broadcast %44 : vector<1x128xf32> to vector<3x128xf32>
    %47 = arith.mulf %45, %46 : vector<3x128xf32>
    %48 = arith.addf %42, %47 : vector<3x128xf32>
    %c0_24 = arith.constant 0 : index
    %c4 = arith.constant 4 : index
    %49 = vector.load %arg8[%c0_24, %c4] : memref<3x16xf32, #tpu.memory_space<vmem>>, vector<3x1xf32>
    %50 = vector.extract_strided_slice %23 {offsets = [4, 0], sizes = [1, 128], strides = [1, 1]} : vector<16x128xf32> to vector<1x128xf32>
    %51 = vector.broadcast %49 : vector<3x1xf32> to vector<3x128xf32>
    %52 = vector.broadcast %50 : vector<1x128xf32> to vector<3x128xf32>
    %53 = arith.mulf %51, %52 : vector<3x128xf32>
    %54 = arith.addf %48, %53 : vector<3x128xf32>
    %c0_25 = arith.constant 0 : index
    %c5 = arith.constant 5 : index
    %55 = vector.load %arg8[%c0_25, %c5] : memref<3x16xf32, #tpu.memory_space<vmem>>, vector<3x1xf32>
    %56 = vector.extract_strided_slice %23 {offsets = [5, 0], sizes = [1, 128], strides = [1, 1]} : vector<16x128xf32> to vector<1x128xf32>
    %57 = vector.broadcast %55 : vector<3x1xf32> to vector<3x128xf32>
    %58 = vector.broadcast %56 : vector<1x128xf32> to vector<3x128xf32>
    %59 = arith.mulf %57, %58 : vector<3x128xf32>
    %60 = arith.addf %54, %59 : vector<3x128xf32>
    %c0_26 = arith.constant 0 : index
    %c6 = arith.constant 6 : index
    %61 = vector.load %arg8[%c0_26, %c6] : memref<3x16xf32, #tpu.memory_space<vmem>>, vector<3x1xf32>
    %62 = vector.extract_strided_slice %23 {offsets = [6, 0], sizes = [1, 128], strides = [1, 1]} : vector<16x128xf32> to vector<1x128xf32>
    %63 = vector.broadcast %61 : vector<3x1xf32> to vector<3x128xf32>
    %64 = vector.broadcast %62 : vector<1x128xf32> to vector<3x128xf32>
    %65 = arith.mulf %63, %64 : vector<3x128xf32>
    %66 = arith.addf %60, %65 : vector<3x128xf32>
    %c0_27 = arith.constant 0 : index
    %c7 = arith.constant 7 : index
    %67 = vector.load %arg8[%c0_27, %c7] : memref<3x16xf32, #tpu.memory_space<vmem>>, vector<3x1xf32>
    %68 = vector.extract_strided_slice %23 {offsets = [7, 0], sizes = [1, 128], strides = [1, 1]} : vector<16x128xf32> to vector<1x128xf32>
    %69 = vector.broadcast %67 : vector<3x1xf32> to vector<3x128xf32>
    %70 = vector.broadcast %68 : vector<1x128xf32> to vector<3x128xf32>
    %71 = arith.mulf %69, %70 : vector<3x128xf32>
    %72 = arith.addf %66, %71 : vector<3x128xf32>
    %c0_28 = arith.constant 0 : index
    %c8 = arith.constant 8 : index
    %73 = vector.load %arg8[%c0_28, %c8] : memref<3x16xf32, #tpu.memory_space<vmem>>, vector<3x1xf32>
    %74 = vector.extract_strided_slice %23 {offsets = [8, 0], sizes = [1, 128], strides = [1, 1]} : vector<16x128xf32> to vector<1x128xf32>
    %75 = vector.broadcast %73 : vector<3x1xf32> to vector<3x128xf32>
    %76 = vector.broadcast %74 : vector<1x128xf32> to vector<3x128xf32>
    %77 = arith.mulf %75, %76 : vector<3x128xf32>
    %78 = arith.addf %72, %77 : vector<3x128xf32>
    %c0_29 = arith.constant 0 : index
    %c9 = arith.constant 9 : index
    %79 = vector.load %arg8[%c0_29, %c9] : memref<3x16xf32, #tpu.memory_space<vmem>>, vector<3x1xf32>
    %80 = vector.extract_strided_slice %23 {offsets = [9, 0], sizes = [1, 128], strides = [1, 1]} : vector<16x128xf32> to vector<1x128xf32>
    %81 = vector.broadcast %79 : vector<3x1xf32> to vector<3x128xf32>
    %82 = vector.broadcast %80 : vector<1x128xf32> to vector<3x128xf32>
    %83 = arith.mulf %81, %82 : vector<3x128xf32>
    %84 = arith.addf %78, %83 : vector<3x128xf32>
    %c0_30 = arith.constant 0 : index
    %c10 = arith.constant 10 : index
    %85 = vector.load %arg8[%c0_30, %c10] : memref<3x16xf32, #tpu.memory_space<vmem>>, vector<3x1xf32>
    %86 = vector.extract_strided_slice %23 {offsets = [10, 0], sizes = [1, 128], strides = [1, 1]} : vector<16x128xf32> to vector<1x128xf32>
    %87 = vector.broadcast %85 : vector<3x1xf32> to vector<3x128xf32>
    %88 = vector.broadcast %86 : vector<1x128xf32> to vector<3x128xf32>
    %89 = arith.mulf %87, %88 : vector<3x128xf32>
    %90 = arith.addf %84, %89 : vector<3x128xf32>
    %c0_31 = arith.constant 0 : index
    %c11 = arith.constant 11 : index
    %91 = vector.load %arg8[%c0_31, %c11] : memref<3x16xf32, #tpu.memory_space<vmem>>, vector<3x1xf32>
    %92 = vector.extract_strided_slice %23 {offsets = [11, 0], sizes = [1, 128], strides = [1, 1]} : vector<16x128xf32> to vector<1x128xf32>
    %93 = vector.broadcast %91 : vector<3x1xf32> to vector<3x128xf32>
    %94 = vector.broadcast %92 : vector<1x128xf32> to vector<3x128xf32>
    %95 = arith.mulf %93, %94 : vector<3x128xf32>
    %96 = arith.addf %90, %95 : vector<3x128xf32>
    %c0_32 = arith.constant 0 : index
    %c12 = arith.constant 12 : index
    %97 = vector.load %arg8[%c0_32, %c12] : memref<3x16xf32, #tpu.memory_space<vmem>>, vector<3x1xf32>
    %98 = vector.extract_strided_slice %23 {offsets = [12, 0], sizes = [1, 128], strides = [1, 1]} : vector<16x128xf32> to vector<1x128xf32>
    %99 = vector.broadcast %97 : vector<3x1xf32> to vector<3x128xf32>
    %100 = vector.broadcast %98 : vector<1x128xf32> to vector<3x128xf32>
    %101 = arith.mulf %99, %100 : vector<3x128xf32>
    %102 = arith.addf %96, %101 : vector<3x128xf32>
    %c0_33 = arith.constant 0 : index
    %c13 = arith.constant 13 : index
    %103 = vector.load %arg8[%c0_33, %c13] : memref<3x16xf32, #tpu.memory_space<vmem>>, vector<3x1xf32>
    %104 = vector.extract_strided_slice %23 {offsets = [13, 0], sizes = [1, 128], strides = [1, 1]} : vector<16x128xf32> to vector<1x128xf32>
    %105 = vector.broadcast %103 : vector<3x1xf32> to vector<3x128xf32>
    %106 = vector.broadcast %104 : vector<1x128xf32> to vector<3x128xf32>
    %107 = arith.mulf %105, %106 : vector<3x128xf32>
    %108 = arith.addf %102, %107 : vector<3x128xf32>
    %c0_34 = arith.constant 0 : index
    %c14 = arith.constant 14 : index
    %109 = vector.load %arg8[%c0_34, %c14] : memref<3x16xf32, #tpu.memory_space<vmem>>, vector<3x1xf32>
    %110 = vector.extract_strided_slice %23 {offsets = [14, 0], sizes = [1, 128], strides = [1, 1]} : vector<16x128xf32> to vector<1x128xf32>
    %111 = vector.broadcast %109 : vector<3x1xf32> to vector<3x128xf32>
    %112 = vector.broadcast %110 : vector<1x128xf32> to vector<3x128xf32>
    %113 = arith.mulf %111, %112 : vector<3x128xf32>
    %114 = arith.addf %108, %113 : vector<3x128xf32>
    %c0_35 = arith.constant 0 : index
    %c15 = arith.constant 15 : index
    %115 = vector.load %arg8[%c0_35, %c15] : memref<3x16xf32, #tpu.memory_space<vmem>>, vector<3x1xf32>
    %116 = vector.extract_strided_slice %23 {offsets = [15, 0], sizes = [1, 128], strides = [1, 1]} : vector<16x128xf32> to vector<1x128xf32>
    %117 = vector.broadcast %115 : vector<3x1xf32> to vector<3x128xf32>
    %118 = vector.broadcast %116 : vector<1x128xf32> to vector<3x128xf32>
    %119 = arith.mulf %117, %118 : vector<3x128xf32>
    %120 = arith.addf %114, %119 : vector<3x128xf32>
    %c0_36 = arith.constant 0 : index
    %c0_37 = arith.constant 0 : index
    %121 = vector.load %arg9[%c0_36, %c0_37] : memref<3x1xf32, #tpu.memory_space<vmem>>, vector<3x1xf32>
    %122 = vector.broadcast %121 : vector<3x1xf32> to vector<3x128xf32>
    %123 = arith.addf %120, %122 : vector<3x128xf32>
    %cst_38 = arith.constant 0.000000e+00 : f32
    %124 = vector.broadcast %cst_38 : f32 to vector<3x128xf32>
    %125 = arith.maximumf %123, %124 : vector<3x128xf32>
    %cst_39 = arith.constant 0.000000e+00 : f32
    %126 = vector.broadcast %cst_39 : f32 to vector<20x128xf32>
    %c0_40 = arith.constant 0 : index
    %c0_41 = arith.constant 0 : index
    %127 = vector.load %arg10[%c0_40, %c0_41] : memref<20x3xf32, #tpu.memory_space<vmem>>, vector<20x1xf32>
    %128 = vector.extract_strided_slice %125 {offsets = [0, 0], sizes = [1, 128], strides = [1, 1]} : vector<3x128xf32> to vector<1x128xf32>
    %129 = vector.broadcast %127 : vector<20x1xf32> to vector<20x128xf32>
    %130 = vector.broadcast %128 : vector<1x128xf32> to vector<20x128xf32>
    %131 = arith.mulf %129, %130 : vector<20x128xf32>
    %132 = arith.addf %126, %131 : vector<20x128xf32>
    %c0_42 = arith.constant 0 : index
    %c1_43 = arith.constant 1 : index
    %133 = vector.load %arg10[%c0_42, %c1_43] : memref<20x3xf32, #tpu.memory_space<vmem>>, vector<20x1xf32>
    %134 = vector.extract_strided_slice %125 {offsets = [1, 0], sizes = [1, 128], strides = [1, 1]} : vector<3x128xf32> to vector<1x128xf32>
    %135 = vector.broadcast %133 : vector<20x1xf32> to vector<20x128xf32>
    %136 = vector.broadcast %134 : vector<1x128xf32> to vector<20x128xf32>
    %137 = arith.mulf %135, %136 : vector<20x128xf32>
    %138 = arith.addf %132, %137 : vector<20x128xf32>
    %c0_44 = arith.constant 0 : index
    %c2_45 = arith.constant 2 : index
    %139 = vector.load %arg10[%c0_44, %c2_45] : memref<20x3xf32, #tpu.memory_space<vmem>>, vector<20x1xf32>
    %140 = vector.extract_strided_slice %125 {offsets = [2, 0], sizes = [1, 128], strides = [1, 1]} : vector<3x128xf32> to vector<1x128xf32>
    %141 = vector.broadcast %139 : vector<20x1xf32> to vector<20x128xf32>
    %142 = vector.broadcast %140 : vector<1x128xf32> to vector<20x128xf32>
    %143 = arith.mulf %141, %142 : vector<20x128xf32>
    %144 = arith.addf %138, %143 : vector<20x128xf32>
    %c0_46 = arith.constant 0 : index
    %c0_47 = arith.constant 0 : index
    %145 = vector.load %arg11[%c0_46, %c0_47] : memref<20x1xf32, #tpu.memory_space<vmem>>, vector<20x1xf32>
    %146 = vector.broadcast %145 : vector<20x1xf32> to vector<20x128xf32>
    %147 = arith.addf %144, %146 : vector<20x128xf32>
    %cst_48 = arith.constant dense<0xFF800000> : vector<128xf32>
    %148 = vector.multi_reduction <maximumf>, %147, %cst_48 [0] : vector<20x128xf32> to vector<128xf32>
    %149 = vector.shape_cast %148 : vector<128xf32> to vector<1x128xf32>
    %150 = vector.broadcast %149 : vector<1x128xf32> to vector<20x128xf32>
    %151 = arith.subf %147, %150 : vector<20x128xf32>
    %152 = math.exp %151 : vector<20x128xf32>
    %cst_49 = arith.constant dense<0.000000e+00> : vector<128xf32>
    %153 = vector.multi_reduction <add>, %152, %cst_49 [0] : vector<20x128xf32> to vector<128xf32>
    %154 = vector.shape_cast %153 : vector<128xf32> to vector<1x128xf32>
    %155 = math.log %154 : vector<1x128xf32>
    %156 = vector.broadcast %155 : vector<1x128xf32> to vector<20x128xf32>
    %157 = arith.subf %151, %156 : vector<20x128xf32>
    %c0_50 = arith.constant 0 : index
    %c0_51 = arith.constant 0 : index
    %158 = vector.load %arg12[%c0_50, %c0_51] : memref<20x128xf32, #tpu.memory_space<vmem>>, vector<20x128xf32>
    tpu.vector_store %arg12[%c0_50, %c0_51], %157 {strides = array<i32>} : memref<20x128xf32, #tpu.memory_space<vmem>>, vector<20x128xf32>,
    return
  }
  func.func @transform_0(%arg0: i32) -> (i32, i32) {
    %c0_i32 = arith.constant 0 : i32
    %c0_i32_0 = arith.constant 0 : i32
    return %c0_i32, %arg0 : i32, i32
  }
  func.func @transform_1(%arg0: i32) -> (i32, i32) {
    %c0_i32 = arith.constant 0 : i32
    %c0_i32_0 = arith.constant 0 : i32
    %c0_i32_1 = arith.constant 0 : i32
    return %c0_i32, %c0_i32_0 : i32, i32
  }
  func.func @transform_2(%arg0: i32) -> (i32, i32) {
    %c0_i32 = arith.constant 0 : i32
    %c0_i32_0 = arith.constant 0 : i32
    %c0_i32_1 = arith.constant 0 : i32
    return %c0_i32, %c0_i32_0 : i32, i32
  }
  func.func @transform_3(%arg0: i32) -> (i32, i32) {
    %c0_i32 = arith.constant 0 : i32
    %c0_i32_0 = arith.constant 0 : i32
    %c0_i32_1 = arith.constant 0 : i32
    return %c0_i32, %c0_i32_0 : i32, i32
  }
  func.func @transform_4(%arg0: i32) -> (i32, i32) {
    %c0_i32 = arith.constant 0 : i32
    %c0_i32_0 = arith.constant 0 : i32
    %c0_i32_1 = arith.constant 0 : i32
    return %c0_i32, %c0_i32_0 : i32, i32
  }
  func.func @transform_5(%arg0: i32) -> (i32, i32) {
    %c0_i32 = arith.constant 0 : i32
    %c0_i32_0 = arith.constant 0 : i32
    %c0_i32_1 = arith.constant 0 : i32
    return %c0_i32, %c0_i32_0 : i32, i32
  }
  func.func @transform_6(%arg0: i32) -> (i32, i32) {
    %c0_i32 = arith.constant 0 : i32
    %c0_i32_0 = arith.constant 0 : i32
    %c0_i32_1 = arith.constant 0 : i32
    return %c0_i32, %c0_i32_0 : i32, i32
  }
  func.func @transform_7(%arg0: i32) -> (i32, i32) {
    %c0_i32 = arith.constant 0 : i32
    %c0_i32_0 = arith.constant 0 : i32
    %c0_i32_1 = arith.constant 0 : i32
    return %c0_i32, %c0_i32_0 : i32, i32
  }
  func.func @transform_8(%arg0: i32) -> (i32, i32) {
    %c0_i32 = arith.constant 0 : i32
    %c0_i32_0 = arith.constant 0 : i32
    %c0_i32_1 = arith.constant 0 : i32
    return %c0_i32, %c0_i32_0 : i32, i32
  }
  func.func @transform_9(%arg0: i32) -> (i32, i32) {
    %c0_i32 = arith.constant 0 : i32
    %c0_i32_0 = arith.constant 0 : i32
    %c0_i32_1 = arith.constant 0 : i32
    return %c0_i32, %c0_i32_0 : i32, i32
  }
  func.func @transform_10(%arg0: i32) -> (i32, i32) {
    %c0_i32 = arith.constant 0 : i32
    %c0_i32_0 = arith.constant 0 : i32
    %c0_i32_1 = arith.constant 0 : i32
    return %c0_i32, %c0_i32_0 : i32, i32
  }
  func.func @transform_11(%arg0: i32) -> (i32, i32) {
    %c0_i32 = arith.constant 0 : i32
    %c0_i32_0 = arith.constant 0 : i32
    return %c0_i32, %arg0 : i32, i32
  }
}

</mosaic_0001>

<bundles_post_ra>
// kernel: tpu_custom_call.1
= control target key start
LH: loop header
LB: loop body
LE: loop exit
PB: predicated region body
PF: predicated region fallthrough
CT: control target
= control target key end

     0   :  { %vm212_vm0 = vcmask 293888   ;;  %vm237_vm1 = vcmask 1041408   ;;  %v1106_v4 = vmov 0   ;;  %s1429_s0 = inlined_call_operand.vmem [shape: bf16[36,128], index: 0, kind: input, shape index: {}]   ;;  %s1430_s1 = inlined_call_operand.vmem [shape: bf16[128,36], index: 1, kind: input, shape index: {}]   ;;  %s1431_s2 = inlined_call_operand.vmem [shape: f32[128,1], index: 2, kind: input, shape index: {}]   ;;  %s1432_s3 = inlined_call_operand.vmem [shape: bf16[64,128], index: 3, kind: input, shape index: {}]   ;;  %s1433_s4 = inlined_call_operand.vmem [shape: f32[64,1], index: 4, kind: input, shape index: {}]   ;;  %s1434_s5 = inlined_call_operand.vmem [shape: bf16[16,64], index: 5, kind: input, shape index: {}]   ;;  %s1435_s6 = inlined_call_operand.vmem [shape: f32[16,1], index: 6, kind: input, shape index: {}]   ;;  %s1436_s7 = inlined_call_operand.vmem [shape: f32[3,16], index: 7, kind: input, shape index: {}]   ;;  %s1437_s8 = inlined_call_operand.vmem [shape: f32[3,1], index: 8, kind: input, shape index: {}]   ;;  %s1438_s9 = inlined_call_operand.vmem [shape: f32[20,3], index: 9, kind: input, shape index: {}]   ;;  %s1439_s10 = inlined_call_operand.vmem [shape: f32[20,1], index: 10, kind: input, shape index: {}]   ;;  %s1440_s11 = inlined_call_operand.hbm [shape: f32[20,128], index: 11, kind: output, shape index: {}]  }
   0x1   :  { %v1058_v0 = vld [vmem:[%s1429_s0] sm:$0xff]   ;;  %v1059_v1 = vld [vmem:[%s1429_s0 + $0x8] sm:$0xff]   ;;  %v1060_v2 = vld [vmem:[%s1429_s0 + $0x10] ss:$0 sps:$4 sm:$0x33]   ;;  %1033 = vset.pattern.permute.xlu0 %v1106_v4  ;;  %1034 = vset.pattern.permute.xlu1 %v1106_v4 }
   0x2   :  { %953 = vmatprep.subr.bf16.mxu0 %v1058_v0  ;;  %v1061_v3 = vld [vmem:[%s1430_s1] sm:$0xff]   ;;  %v239_v5 = vsel %vm237_vm1, %v1060_v2, 0  ;;  %v1062_v6 = vld [vmem:[%s1430_s1 + $0x8] sm:$0xff]   ;;  %v1063_v8 = vld [vmem:[%s1430_s1 + $0x10] sm:$0xff]  }
   0x3   :  { %954 = vmatpush3.bf16.msra.mxu0 %v1058_v0  ;;  %959 = vmatprep.mubr.msk.bf16.mxu0 %vm212_vm0, %v1061_v3  ;;  %v61_v7 = vld [vmem:[%s1431_s2] sm:$0xff]  ;;  %v63_v9 = vld [vmem:[%s1431_s2 + $0x10] sm:$0xff]  ;;  %v62_v10 = vld [vmem:[%s1431_s2 + $0x8] sm:$0xff] }
   0x4   :  { %955 = vmatprep.subr.bf16.mxu0 %v1059_v1  ;;  %79 = vperm.xlu0 %1033, %v61_v7   ;;  %v64_v11 = vld [vmem:[%s1431_s2 + $0x18] sm:$0xff]  ;;  %v65_v12 = vld [vmem:[%s1431_s2 + $0x20] sm:$0xff]  ;;  %v66_v13 = vld [vmem:[%s1431_s2 + $0x28] sm:$0xff] }
   0x5   :  { %89 = vperm.xlu1 %1034, %v63_v9   ;;  %v1064_v14 = vld [vmem:[%s1430_s1 + $0x18] sm:$0xff]   ;;  %v1065_v15 = vld [vmem:[%s1430_s1 + $0x20] sm:$0xff]   ;;  %v67_v16 = vld [vmem:[%s1431_s2 + $0x30] sm:$0xff] }
   0x6   :  { %v68_v17 = vld [vmem:[%s1431_s2 + $0x38] sm:$0xff] }
   0x7   :  { %956 = vmatpush3.bf16.msra.mxu0 %v1059_v1 }
   0x8   :  { %1011 = vmatprep.subr.msk.bf16.mxu0 %vm237_vm1, %v1060_v2  ;;  %84 = vperm.xlu0 %1033, %v62_v10  }
   0x9   :  { %94 = vperm.xlu1 %1034, %v64_v11  }
   0xb   :  { %958 = vmatpush3.bf16.msra.mxu0 %v239_v5 }
   0xc   :  { %99 = vperm.xlu0 %1033, %v65_v12  }
   0xd   :  { %104 = vperm.xlu1 %1034, %v66_v13  }
   0xe   :  { %960 = vmatmul.mubr.msk.bf16.vlgmr.msra.gmra.mrb[0].mxu0 %vm212_vm0, %v1062_v6 }
   0xf   :  { %963 = vmatprep.mubr.msk.bf16.mxu0 %vm212_vm0, %v1063_v8 }
  0x16   :  { %964 = vmatmul.mubr.msk.bf16.gmra.mrb[4].mxu0 %vm212_vm0, %v1064_v14 }
  0x17   :  { %16 = vsyncpa [#allocation3], 0  ;;  %967 = vmatprep.mubr.msk.bf16.mxu0 %vm212_vm0, %v1065_v15  ;;  %109 = vperm.xlu0 %1033, %v67_v16   ;;  %v69_v18 = vld [vmem:[%s1431_s2 + $0x40] sm:$0xff]  ;;  %v70_v19 = vld [vmem:[%s1431_s2 + $0x48] sm:$0xff]  ;;  %vm1108_vm2 = vmmov 0   ;;  %vm538_vm3 = vcmask 523264  }
  0x18   :  { %114 = vperm.xlu1 %1034, %v68_v17   ;;  %v1066_v20 = vld [vmem:[%s1430_s1 + $0x28] sm:$0xff]   ;;  %v1067_v21 = vld [vmem:[%s1430_s1 + $0x30] sm:$0xff]   ;;  %v72_v23 = vld [vmem:[%s1431_s2 + $0x58] sm:$0xff]  ;;  %vm848_vm4 = vcmask 1043456  }
  0x19   :  { %v71_v22 = vld [vmem:[%s1431_s2 + $0x50] sm:$0xff]  ;;  %v73_v24 = vld [vmem:[%s1431_s2 + $0x60] sm:$0xff]  ;;  %v74_v25 = vld [vmem:[%s1431_s2 + $0x68] sm:$0xff] }
  0x1a   :  { %v1068_v26 = vld [vmem:[%s1430_s1 + $0x38] sm:$0xff]   ;;  %v75_v27 = vld [vmem:[%s1431_s2 + $0x70] sm:$0xff]  ;;  %v370_v29 = vld [vmem:[%s1433_s4] sm:$0xff] }
  0x1b   :  { %119 = vperm.xlu0 %1033, %v69_v18   ;;  %v76_v28 = vld [vmem:[%s1431_s2 + $0x78] sm:$0xff]  ;;  %v371_v30 = vld [vmem:[%s1433_s4 + $0x8] sm:$0xff]  ;;  %v372_v31 = vld [vmem:[%s1433_s4 + $0x10] sm:$0xff] }
  0x1c   :  { %124 = vperm.xlu1 %1034, %v70_v19   ;;  %v373_v32 = vld [vmem:[%s1433_s4 + $0x18] sm:$0xff]  ;;  %v374_v33 = vld [vmem:[%s1433_s4 + $0x20] sm:$0xff]  ;;  %v375_v34 = vld [vmem:[%s1433_s4 + $0x28] sm:$0xff] }
  0x1d   :  { %v376_v35 = vld [vmem:[%s1433_s4 + $0x30] sm:$0xff]  ;;  %v377_v36 = vld [vmem:[%s1433_s4 + $0x38] sm:$0xff]  ;;  %v521_v37 = vld [vmem:[%s1435_s6] sm:$0xff] }
  0x1e   :  { %968 = vmatmul.mubr.msk.bf16.gmra.mrb[8].mxu0 %vm212_vm0, %v1066_v20  ;;  %v1308_v38 = vld [vmem:[%s1436_s7] sm:$0x7] }
  0x1f   :  { %971 = vmatprep.mubr.msk.bf16.mxu0 %vm212_vm0, %v1067_v21  ;;  %129 = vperm.xlu0 %1033, %v71_v22   ;;  %v1069_v39 = vld [vmem:[%s1432_s3] sm:$0xff]  }
  0x20   :  { %134 = vperm.xlu1 %1034, %v72_v23   ;;  %991 = vmatprep.mubr.bf16.mxu1 %v1069_v39 }
  0x23   :  { %139 = vperm.xlu0 %1033, %v73_v24  }
  0x24   :  { %144 = vperm.xlu1 %1034, %v74_v25  }
  0x26   :  { %972 = vmatmul.mubr.msk.bf16.gmra.mrb[12].mxu0 %vm212_vm0, %v1068_v26 }
  0x27   :  { %149 = vperm.xlu0 %1033, %v75_v27  }
  0x28   :  { %154 = vperm.xlu1 %1034, %v76_v28  }
  0x2b   :  { %380 = vperm.xlu0 %1033, %v370_v29  }
  0x2c   :  { %385 = vperm.xlu1 %1034, %v371_v30  }
  0x2f   :  { %390 = vperm.xlu0 %1033, %v372_v31  }
  0x30   :  { %395 = vperm.xlu1 %1034, %v373_v32  }
  0x33   :  { %400 = vperm.xlu0 %1033, %v374_v33  }
  0x34   :  { %405 = vperm.xlu1 %1034, %v375_v34  }
  0x37   :  { %410 = vperm.xlu0 %1033, %v376_v35  }
  0x38   :  { %415 = vperm.xlu1 %1034, %v377_v36  }
  0x3b   :  { %525 = vperm.xlu0 %1033, %v521_v37  }
  0x3c   :  { %588 = vperm.xlu1 %1034, %v1308_v38  }
  0x83   :  { %v80_v40 = vpop.permute.xlu0 %79 }
  0x84   :  { %v90_v41 = vpop.permute.xlu1 %89 }
  0x87   :  { %v85_v42 = vpop.permute.xlu0 %84 }
  0x88   :  { %v95_v43 = vpop.permute.xlu1 %94 }
  0x8b   :  { %v100_v44 = vpop.permute.xlu0 %99 }
  0x8c   :  { %v105_v45 = vpop.permute.xlu1 %104 }
  0x96   :  { %v110_v46 = vpop.permute.xlu0 %109 }
  0x97   :  { %v115_v50 = vpop.permute.xlu1 %114 }
  0x9a   :  { %v120_v58 = vpop.permute.xlu0 %119 }
  0x9b   :  { %v125_v62 = vpop.permute.xlu1 %124 }
  0x9e   :  { %v130_v8 = vpop.permute.xlu0 %129 }
  0x9f   :  { %v135_v12 = vpop.permute.xlu1 %134 }
  0xa2   :  { %v140_v20 = vpop.permute.xlu0 %139 }
  0xa3   :  { %v145_v25 = vpop.permute.xlu1 %144 }
  0xa6   :  { %v150_v32 = vpop.permute.xlu0 %149 }
  0xa7   :  { %v155_v37 = vpop.permute.xlu1 %154 }
  0xe1   :  { %v961_v47 = vpop.f32.mrb[0].mxu0 }
  0xe2   :  { %v284_v48 = vadd.f32 %v961_v47, %v90_v41  ;;  %v275_v49 = vpop.f32.mrb[1].mxu0 }
  0xe3   :  { %v276_v51 = vadd.f32 %v275_v49, %v80_v40  ;;  %v962_v52 = vpop.f32.mrb[2].mxu0 }
  0xe4   :  { %v287_v53 = vadd.f32 %v962_v52, %v95_v43  ;;  %v278_v54 = vpop.f32.mrb[3].mxu0  ;;  %v340_v56 = vmax.f32 %v284_v48, 0.0  ;;  %v1072_v52 = vld [vmem:[%s1432_s3 + $0x18] sm:$0xff]  }
  0xe5   :  { %v279_v55 = vadd.f32 %v278_v54, %v85_v42  ;;  %v338_v59 = vmax.f32 %v276_v51, 0.0  ;;  %v1071_v51 = vld [vmem:[%s1432_s3 + $0x10] sm:$0xff]   ;;  %v1109_v54 = vmov 2  }
  0xe6   :  { %v341_v57 = vmax.f32 %v287_v53, 0.0  ;;  %v1107_v53 = vmov 0.0   ;;  %1036 = vset.pattern.permute.xlu1 %v1109_v54 }
  0xe7   :  { %v339_v60 = vmax.f32 %v279_v55, 0.0  ;;  %999 = vmatprep.subr.bf16.mxu0 %v1107_v53  ;;  %1007 = vmatprep.mubr.msk.bf16.mxu0 %vm1108_vm2, %v1107_v53  ;;  %v1110_v55 = vmov 1  }
  0xe8   :  { %v355_v61 = vpack.c.bf16 %v341_v57, %v340_v56  ;;  %608 = vperm.xlu1 %1036, %v1308_v38   ;;  %1035 = vset.pattern.permute.xlu0 %v1110_v55  ;;  %v1111_v56 = vmov 3   ;;  %v1112_v57 = vmov 4  }
  0xe9   :  { %v965_v63 = vpop.f32.mrb[4].mxu0  ;;  %v354_v0 = vpack.c.bf16 %v339_v60, %v338_v59  ;;  %598 = vperm.xlu0 %1035, %v1308_v38   ;;  %v1113_v59 = vmov 6   ;;  %v1114_v60 = vmov 5  }
  0xea   :  { %v300_v1 = vadd.f32 %v965_v63, %v110_v46  ;;  %v291_v2 = vpop.f32.mrb[5].mxu0  ;;  %v1117_v63 = vmov 12  }
  0xeb   :  { %v292_v3 = vadd.f32 %v291_v2, %v100_v44  ;;  %v966_v5 = vpop.f32.mrb[6].mxu0  ;;  %975 = vmatprep.subr.bf16.mxu1 %v354_v0  ;;  %v1120_v2 = vmov 10  }
  0xec   :  { %v303_v6 = vadd.f32 %v966_v5, %v115_v50  ;;  %v294_v7 = vpop.f32.mrb[7].mxu0  ;;  %976 = vmatpush3.bf16.msra.mxu1 %v354_v0  ;;  %v344_v10 = vmax.f32 %v300_v1, 0.0  ;;  %v1070_v50 = vld [vmem:[%s1432_s3 + $0x8] sm:$0xff]   ;;  %1037 = vset.pattern.permute.xlu1 %v1111_v56  ;;  %v1118_v0 = vmov 8   ;;  %v1119_v1 = vmov 15  }
  0xed   :  { %v295_v9 = vadd.f32 %v294_v7, %v105_v45  ;;  %977 = vmatprep.subr.bf16.mxu1 %v355_v61  ;;  %v342_v13 = vmax.f32 %v292_v3, 0.0  ;;  %618 = vperm.xlu1 %1037, %v1308_v38   ;;  %v756_v3 = vld [vmem:[%s1438_s9 + $0x8] sm:$0xff]  ;;  %v1121_v5 = vmov 11   ;;  %v1122_v7 = vmov 13  }
  0xee   :  { %v345_v11 = vmax.f32 %v303_v6, 0.0  ;;  %1038 = vset.pattern.permute.xlu0 %v1112_v57  ;;  %v757_v6 = vld [vmem:[%s1438_s9 + $0x10] sm:$0xf] }
  0xef   :  { %v343_v14 = vmax.f32 %v295_v9, 0.0  ;;  %628 = vperm.xlu0 %1038, %v1308_v38   ;;  %v827_v9 = vld [vmem:[%s1439_s10] sm:$0xff] }
  0xf0   :  { %v357_v15 = vpack.c.bf16 %v345_v11, %v344_v10  ;;  %978 = vmatpush3.bf16.msra.mxu1 %v355_v61  ;;  %v1115_v61 = vmov 9   ;;  %v1123_v10 = vmov 14   ;;  %v747_v11 = vld [vmem:[%s1437_s8] sm:$0x7] }
  0xf1   :  { %v356_v16 = vpack.c.bf16 %v343_v14, %v342_v13  ;;  %v969_v17 = vpop.f32.mrb[8].mxu0  ;;  %1039 = vset.pattern.permute.xlu1 %v1106_v4  ;;  %v381_v13 = vpop.permute.xlu0 %380 }
  0xf2   :  { %v316_v18 = vadd.f32 %v969_v17, %v130_v8  ;;  %v307_v19 = vpop.f32.mrb[9].mxu0  ;;  %v755_v8 = vld [vmem:[%s1438_s9] sm:$0xff]  ;;  %v386_v14 = vpop.permute.xlu1 %385 }
  0xf3   :  { %v308_v21 = vadd.f32 %v307_v19, %v120_v58  ;;  %v970_v22 = vpop.f32.mrb[10].mxu0  ;;  %979 = vmatprep.subr.bf16.mxu1 %v356_v16  ;;  %v522_v58 = vld [vmem:[%s1435_s6 + $0x8] sm:$0xff]  ;;  %1041 = vset.pattern.permute.xlu0 %v1113_v59 }
  0xf4   :  { %v319_v23 = vadd.f32 %v970_v22, %v135_v12  ;;  %v310_v24 = vpop.f32.mrb[11].mxu0  ;;  %980 = vmatpush3.bf16.msra.mxu1 %v356_v16  ;;  %v348_v27 = vmax.f32 %v316_v18, 0.0  ;;  %530 = vperm.xlu1 %1039, %v522_v58   ;;  %v829_v12 = vld [vmem:[%s1439_s10 + $0x10] sm:$0xf] }
  0xf5   :  { %v311_v26 = vadd.f32 %v310_v24, %v125_v62  ;;  %981 = vmatprep.subr.bf16.mxu1 %v357_v15  ;;  %v346_v29 = vmax.f32 %v308_v21, 0.0  ;;  %648 = vperm.xlu0 %1041, %v1308_v38   ;;  %v1116_v62 = vmov 7  }
  0xf6   :  { %v349_v28 = vmax.f32 %v319_v23, 0.0  ;;  %v396_v16 = vpop.permute.xlu1 %395 }
  0xf7   :  { %v347_v30 = vmax.f32 %v311_v26, 0.0 }
  0xf8   :  { %v359_v31 = vpack.c.bf16 %v349_v28, %v348_v27  ;;  %982 = vmatpush3.bf16.msra.mxu1 %v357_v15  ;;  %1040 = vset.pattern.permute.xlu1 %v1114_v60  ;;  %v391_v15 = vpop.permute.xlu0 %390  ;;  %v591_v60 = vlaneseq }
  0xf9   :  { %v358_v33 = vpack.c.bf16 %v347_v30, %v346_v29  ;;  %v973_v34 = vpop.f32.mrb[12].mxu0  ;;  %638 = vperm.xlu1 %1040, %v1308_v38   ;;  %1044 = vset.pattern.permute.xlu0 %v1115_v61 }
  0xfa   :  { %v332_v35 = vadd.f32 %v973_v34, %v150_v32  ;;  %v323_v36 = vpop.f32.mrb[13].mxu0  ;;  %678 = vperm.xlu0 %1044, %v1308_v38  }
  0xfb   :  { %v324_v39 = vadd.f32 %v323_v36, %v140_v20  ;;  %v974_v40 = vpop.f32.mrb[14].mxu0  ;;  %983 = vmatprep.subr.bf16.mxu1 %v358_v33 }
  0xfc   :  { %v335_v41 = vadd.f32 %v974_v40, %v155_v37  ;;  %v326_v42 = vpop.f32.mrb[15].mxu0  ;;  %984 = vmatpush3.bf16.msra.mxu1 %v358_v33  ;;  %v352_v44 = vmax.f32 %v332_v35, 0.0  ;;  %v401_v20 = vpop.permute.xlu0 %400 }
  0xfd   :  { %v327_v43 = vadd.f32 %v326_v42, %v145_v25  ;;  %985 = vmatprep.subr.bf16.mxu1 %v359_v31  ;;  %v350_v46 = vmax.f32 %v324_v39, 0.0  ;;  %1042 = vset.pattern.permute.xlu1 %v1116_v62  ;;  %v406_v25 = vpop.permute.xlu1 %405  ;;  %v1384_v62 = vshrl.u32 %v591_v60, 7 }
  0xfe   :  { %v353_v45 = vmax.f32 %v335_v41, 0.0  ;;  %658 = vperm.xlu1 %1042, %v1308_v38   ;;  %1047 = vset.pattern.permute.xlu0 %v1117_v63 }
  0xff   :  { %v351_v47 = vmax.f32 %v327_v43, 0.0  ;;  %708 = vperm.xlu0 %1047, %v1308_v38  }
 0x100   :  { %v361_v48 = vpack.c.bf16 %v353_v45, %v352_v44  ;;  %986 = vmatpush3.bf16.msra.mxu1 %v359_v31  ;;  %v411_v31 = vpop.permute.xlu0 %410 }
 0x101   :  { %v360_v49 = vpack.c.bf16 %v351_v47, %v350_v46  ;;  %v416_v36 = vpop.permute.xlu1 %415 }
 0x102   :  { %1043 = vset.pattern.permute.xlu1 %v1118_v0 }
 0x103   :  { %987 = vmatprep.subr.bf16.mxu1 %v360_v49  ;;  %668 = vperm.xlu1 %1043, %v1308_v38  }
 0x104   :  { %988 = vmatpush3.bf16.msra.mxu1 %v360_v49  ;;  %1050 = vset.pattern.permute.xlu0 %v1119_v1  ;;  %v1073_v49 = vld [vmem:[%s1434_s5] sm:$0xff]   ;;  %v526_v61 = vpop.permute.xlu0 %525  ;;  %s1124_s5 = smov [#allocation2]  }
 0x105   :  { %989 = vmatprep.subr.bf16.mxu1 %v361_v48  ;;  %738 = vperm.xlu0 %1050, %v1308_v38   ;;  %s889_s26 = sshll.u32 %s1124_s5, 4  ;;  %s890_s26 = int_to_ptr.vmem [resolvable:$true] %s889_s26 }
 0x106   :  { %s1082_s0 = scalar_lea.vmem %s890_s26, 384  ;;  %p1087_p1 = scmp.lt.s32.totalorder %s890_s26, %s890_s26 }
 0x107   :  { %1045 = vset.pattern.permute.xlu1 %v1120_v2  ;;  %p1083_p0 = scmp.ne.s32.totalorder %s890_s26, %s1082_s0  ;;  %p1088_p2 = scmp.lt.s32.totalorder %s1082_s0, %s1082_s0 }
 0x108   :  { %990 = vmatpush3.bf16.msra.mxu1 %v361_v48  ;;  %688 = vperm.xlu1 %1045, %v1308_v38  }
 0x109   :  { %1052 = vset.pattern.permute.xlu0 %v1106_v4  ;;  %p1089_p3 = por %p1088_p2, %p1087_p1 }
 0x10a   :  { %765 = vperm.xlu0 %1052, %v756_v3  }
 0x10b   :  { %992 = vmatmul.mubr.bf16.vlgmr.msra.gmra.mrb[0].mxu1 %v1070_v50  ;;  %v589_v50 = vpop.permute.xlu1 %588  ;;  %p1090_p4 = pnand %p1089_p3, %p1083_p0 }
 0x10c   :  { %995 = vmatprep.mubr.bf16.mxu1 %v1071_v51  ;;  %1046 = vset.pattern.permute.xlu1 %v1121_v5  ;;  %v1389_v5 = vsub.s32 0, %v1384_v62 }
 0x10d   :  { %698 = vperm.xlu1 %1046, %v1308_v38  }
 0x10e   :  { %770 = vperm.xlu0 %1052, %v757_v6  }
 0x111   :  { %1048 = vset.pattern.permute.xlu1 %v1122_v7 }
 0x112   :  { %1054 = vset.pattern.permute.xlu0 %v1109_v54  ;;  %718 = vperm.xlu1 %1048, %v1308_v38  }
 0x113   :  { %996 = vmatmul.mubr.bf16.gmra.mrb[4].mxu1 %v1072_v52  ;;  %806 = vperm.xlu0 %1054, %v755_v8  }
 0x116   :  { %1049 = vset.pattern.permute.xlu1 %v1123_v10  ;;  %v623_v10 = vsub.s32 3, %v1384_v62 }
 0x117   :  { %1056 = vset.pattern.permute.xlu0 %v1106_v4  ;;  %728 = vperm.xlu1 %1049, %v1308_v38   ;;  %v828_v38 = vld [vmem:[%s1439_s10 + $0x8] sm:$0xff] }
 0x118   :  { %832 = vperm.xlu0 %1056, %v827_v9  }
 0x11b   :  { %1051 = vset.pattern.permute.xlu1 %v1106_v4 }
 0x11c   :  { %750 = vperm.xlu1 %1051, %v747_v11  }
 0x120   :  { %760 = vperm.xlu1 %1051, %v755_v8  }
 0x124   :  { %1053 = vset.pattern.permute.xlu1 %v1110_v55 }
 0x125   :  { %784 = vperm.xlu1 %1053, %v755_v8   ;;  %v1395_v8 = vsub.s32 2, %v1384_v62 }
 0x129   :  { %788 = vperm.xlu1 %1053, %v756_v3  }
 0x12d   :  { %792 = vperm.xlu1 %1053, %v757_v6  }
 0x131   :  { %1055 = vset.pattern.permute.xlu1 %v1109_v54 }
 0x132   :  { %810 = vperm.xlu1 %1055, %v756_v3  }
 0x136   :  { %814 = vperm.xlu1 %1055, %v757_v6   ;;  %v1392_v6 = vsub.s32 1, %v1384_v62 }
 0x13a   :  { %1057 = vset.pattern.permute.xlu1 %v1106_v4 }
 0x13b   :  { %837 = vperm.xlu1 %1057, %v828_v38   ;;  %v633_v38 = vsub.s32 4, %v1384_v62 }
 0x13f   :  { %842 = vperm.xlu1 %1057, %v829_v12  }
 0x167   :  { %v609_v51 = vpop.permute.xlu1 %608 }
 0x168   :  { %v599_v0 = vpop.permute.xlu0 %598 }
 0x16c   :  { %v619_v52 = vpop.permute.xlu1 %618 }
 0x173   :  { %v531_v54 = vpop.permute.xlu1 %530 }
 0x178   :  { %v639_v55 = vpop.permute.xlu1 %638 }
 0x17d   :  { %v659_v56 = vpop.permute.xlu1 %658 }
 0x182   :  { %v669_v57 = vpop.permute.xlu1 %668 }
 0x187   :  { %v1378_v58 = vpop.permute.xlu1 %688 }
 0x18c   :  { %v1380_v59 = vpop.permute.xlu1 %698 }
 0x1de   :  { %v993_v17 = vpop.f32.mrb[0].mxu1 }
 0x1df   :  { %v485_v18 = vadd.f32 %v993_v17, %v391_v15  ;;  %v476_v19 = vpop.f32.mrb[1].mxu1  ;;  %v629_v15 = vpop.permute.xlu0 %628  ;;  %v643_v17 = vsub.s32 5, %v1384_v62 }
 0x1e0   :  { %v477_v21 = vadd.f32 %v476_v19, %v381_v13  ;;  %v994_v22 = vpop.f32.mrb[2].mxu1 }
 0x1e1   :  { %v488_v23 = vadd.f32 %v994_v22, %v396_v16  ;;  %v479_v24 = vpop.f32.mrb[3].mxu1  ;;  %v509_v26 = vmax.f32 %v485_v18, 0.0 }
 0x1e2   :  { %v480_v4 = vadd.f32 %v479_v24, %v386_v14  ;;  %v507_v28 = vmax.f32 %v477_v21, 0.0  ;;  %v653_v21 = vsub.s32 6, %v1384_v62 }
 0x1e3   :  { %v510_v27 = vmax.f32 %v488_v23, 0.0 }
 0x1e4   :  { %v508_v29 = vmax.f32 %v480_v4, 0.0 }
 0x1e5   :  { %v516_v30 = vpack.c.bf16 %v510_v27, %v509_v26  ;;  %v663_v26 = vsub.s32 7, %v1384_v62 }
 0x1e6   :  { %v515_v32 = vpack.c.bf16 %v508_v29, %v507_v28  ;;  %v997_v33 = vpop.f32.mrb[4].mxu1 }
 0x1e7   :  { %v501_v34 = vadd.f32 %v997_v33, %v411_v31  ;;  %v492_v35 = vpop.f32.mrb[5].mxu1 }
 0x1e8   :  { %v493_v37 = vadd.f32 %v492_v35, %v401_v20  ;;  %v998_v39 = vpop.f32.mrb[6].mxu1  ;;  %1000 = vmatpush3.bf16.msra.mxu0 %v515_v32 }
 0x1e9   :  { %v504_v40 = vadd.f32 %v998_v39, %v416_v36  ;;  %v495_v41 = vpop.f32.mrb[7].mxu1  ;;  %1001 = vmatprep.subr.bf16.mxu0 %v1107_v53  ;;  %v513_v43 = vmax.f32 %v501_v34, 0.0 }
 0x1ea   :  { %v496_v42 = vadd.f32 %v495_v41, %v406_v25  ;;  %v511_v45 = vmax.f32 %v493_v37, 0.0 }
 0x1eb   :  { %v514_v44 = vmax.f32 %v504_v40, 0.0 }
 0x1ec   :  { %v512_v46 = vmax.f32 %v496_v42, 0.0  ;;  %1002 = vmatpush3.bf16.msra.mxu0 %v516_v30  ;;  %v649_v30 = vpop.permute.xlu0 %648 }
 0x1ed   :  { %v518_v47 = vpack.c.bf16 %v514_v44, %v513_v43  ;;  %1003 = vmatprep.subr.bf16.mxu0 %v1107_v53 }
 0x1ee   :  { %v517_v48 = vpack.c.bf16 %v512_v46, %v511_v45 }
 0x1f0   :  { %1004 = vmatpush3.bf16.msra.mxu0 %v517_v48  ;;  %v679_v43 = vpop.permute.xlu0 %678 }
 0x1f1   :  { %1005 = vmatprep.subr.bf16.mxu0 %v1107_v53  ;;  %v1382_v53 = vpop.permute.xlu1 %718 }
 0x1f4   :  { %1006 = vmatpush3.bf16.msra.mxu0 %v518_v47 }
 0x1f5   :  { %v1386_v63 = vpop.permute.xlu1 %728 }
 0x1f7   :  { %1008 = vmatmul.mubr.msk.bf16.vlgmr.msra.gmra.mrb[16].mxu0 %vm538_vm3, %v1073_v49 }
 0x1f9   :  { %v751_v14 = vpop.permute.xlu1 %750 }
 0x1fd   :  { %v761_v29 = vpop.permute.xlu1 %760 }
 0x201   :  { %v785_v42 = vpop.permute.xlu1 %784 }
 0x2ca   :  { %v576_v1 = vpop.f32.mrb[16].mxu0 }
 0x2cb   :  { %v577_v2 = vadd.f32 %v576_v1, %v526_v61  ;;  %v1009_v3 = vpop.f32.mrb[17].mxu0 }
 0x2cc   :  { %v579_v7 = vpop.f32.mrb[18].mxu0 }
 0x2cd   :  { %v583_v9 = vmax.f32 %v577_v2, 0.0  ;;  %v1010_v11 = vpop.f32.mrb[19].mxu0  ;;  %v580_v22 = vadd.f32 %v579_v7, %v531_v54  ;;  %v789_v54 = vpop.permute.xlu1 %788 }
 0x2cf   :  { %v594_v12 = vrot.slane %v583_v9, %v1389_v5  ;;  %v604_v13 = vrot.slane %v583_v9, %v1392_v6  ;;  %v614_v16 = vrot.slane %v583_v9, %v1395_v8  ;;  %v624_v20 = vrot.slane %v583_v9, %v623_v10 }
 0x2d0   :  { %v634_v25 = vrot.slane %v583_v9, %v633_v38  ;;  %v644_v4 = vrot.slane %v583_v9, %v643_v17  ;;  %v584_v31 = vmax.f32 %v580_v22, 0.0  ;;  %v654_v34 = vrot.slane %v583_v9, %v653_v21 }
 0x2d1   :  { %v595_v18 = vmul.f32 %v594_v12, %v589_v50  ;;  %v605_v19 = vmul.f32 %v604_v13, %v599_v0  ;;  %v615_v24 = vmul.f32 %v614_v16, %v609_v51  ;;  %v625_v28 = vmul.f32 %v624_v20, %v619_v52 }
 0x2d2   :  { %v635_v33 = vmul.f32 %v634_v25, %v629_v15  ;;  %v645_v35 = vmul.f32 %v644_v4, %v639_v55  ;;  %v664_v37 = vrot.slane %v583_v9, %v663_v26  ;;  %v655_v40 = vmul.f32 %v654_v34, %v649_v30  ;;  %v709_v55 = vpop.permute.xlu0 %708  ;;  %v793_v9 = vpop.permute.xlu1 %792 }
 0x2d3   :  { %v606_v23 = vadd.f32 %v605_v19, %v595_v18  ;;  %v674_v41 = vrot.slane %v584_v31, %v1389_v5  ;;  %v684_v46 = vrot.slane %v584_v31, %v1392_v6  ;;  %v694_v49 = vrot.slane %v584_v31, %v1395_v8 }
 0x2d4   :  { %v665_v45 = vmul.f32 %v664_v37, %v659_v56  ;;  %v704_v52 = vrot.slane %v584_v31, %v623_v10  ;;  %v714_v62 = vrot.slane %v584_v31, %v633_v38  ;;  %v724_v0 = vrot.slane %v584_v31, %v643_v17 }
 0x2d5   :  { %v616_v27 = vadd.f32 %v615_v24, %v606_v23  ;;  %v675_v48 = vmul.f32 %v674_v41, %v669_v57  ;;  %v685_v51 = vmul.f32 %v684_v46, %v679_v43  ;;  %v695_v61 = vmul.f32 %v694_v49, %v1378_v58 }
 0x2d6   :  { %v705_v2 = vmul.f32 %v704_v52, %v1380_v59  ;;  %v715_v3 = vmul.f32 %v714_v62, %v709_v55  ;;  %v734_v7 = vrot.slane %v584_v31, %v653_v21  ;;  %v739_v57 = vpop.permute.xlu0 %738  ;;  %v725_v11 = vmul.f32 %v724_v0, %v1382_v53  ;;  %v811_v16 = vpop.permute.xlu1 %810 }
 0x2d7   :  { %v626_v32 = vadd.f32 %v625_v28, %v616_v27  ;;  %v744_v13 = vrot.slane %v584_v31, %v663_v26 }
 0x2d8   :  { %v735_v15 = vmul.f32 %v734_v7, %v1386_v63 }
 0x2d9   :  { %v636_v36 = vadd.f32 %v635_v33, %v626_v32  ;;  %v745_v38 = vmul.f32 %v744_v13, %v739_v57 }
 0x2da   :  { %v766_v18 = vpop.permute.xlu0 %765  ;;  %v815_v20 = vpop.permute.xlu1 %814 }
 0x2db   :  { %v646_v39 = vadd.f32 %v645_v35, %v636_v36 }
 0x2dd   :  { %v656_v44 = vadd.f32 %v655_v40, %v646_v39 }
 0x2de   :  { %v771_v59 = vpop.permute.xlu0 %770  ;;  %v838_v27 = vpop.permute.xlu1 %837 }
 0x2df   :  { %v666_v47 = vadd.f32 %v665_v45, %v656_v44 }
 0x2e1   :  { %v676_v50 = vadd.f32 %v675_v48, %v666_v47 }
 0x2e2   :  { %v807_v24 = vpop.permute.xlu0 %806 }
 0x2e3   :  { %v686_v60 = vadd.f32 %v685_v51, %v676_v50 }
 0x2e5   :  { %v696_v1 = vadd.f32 %v695_v61, %v686_v60 }
 0x2e6   :  { %v833_v36 = vpop.permute.xlu0 %832 }
 0x2e7   :  { %v706_v56 = vadd.f32 %v705_v2, %v696_v1 }
 0x2e9   :  { %v716_v12 = vadd.f32 %v715_v3, %v706_v56 }
 0x2eb   :  { %v726_v10 = vadd.f32 %v725_v11, %v716_v12 }
 0x2ed   :  { %v736_v58 = vadd.f32 %v735_v15, %v726_v10 }
 0x2ef   :  { %v746_v17 = vadd.f32 %v745_v38, %v736_v58 }
 0x2f1   :  { %v753_v19 = vadd.f32 %v751_v14, %v746_v17 }
 0x2f3   :  { %v754_v22 = vmax.f32 %v753_v19, 0.0 }
 0x2f5   :  { %v776_v21 = vrot.slane %v754_v22, %v1389_v5  ;;  %v798_v23 = vrot.slane %v754_v22, %v1392_v6  ;;  %v820_v53 = vrot.slane %v754_v22, %v1395_v8  ;;  %v843_v8 = vpop.permute.xlu1 %842 }
 0x2f7   :  { %v777_v25 = vmul.f32 %v776_v21, %v761_v29  ;;  %v799_v4 = vmul.f32 %v798_v23, %v785_v42  ;;  %v800_v26 = vmul.f32 %v798_v23, %v789_v54  ;;  %v801_v63 = vmul.f32 %v798_v23, %v793_v9 }
 0x2f8   :  { %v778_v28 = vmul.f32 %v776_v21, %v766_v18  ;;  %v779_v30 = vmul.f32 %v776_v21, %v771_v59  ;;  %v821_v32 = vmul.f32 %v820_v53, %v807_v24  ;;  %v822_v33 = vmul.f32 %v820_v53, %v811_v16 }
 0x2f9   :  { %v802_v31 = vadd.f32 %v799_v4, %v777_v25  ;;  %v823_v35 = vmul.f32 %v820_v53, %v815_v20 }
 0x2fa   :  { %v803_v14 = vadd.f32 %v800_v26, %v778_v28  ;;  %v804_v34 = vadd.f32 %v801_v63, %v779_v30 }
 0x2fb   :  { %v824_v5 = vadd.f32 %v821_v32, %v802_v31 }
 0x2fc   :  { %v825_v37 = vadd.f32 %v822_v33, %v803_v14  ;;  %v826_v6 = vadd.f32 %v823_v35, %v804_v34 }
 0x2fd   :  { %v845_v39 = vadd.f32 %v833_v36, %v824_v5 }
 0x2fe   :  { %v846_v29 = vadd.f32 %v838_v27, %v825_v37  ;;  %v847_v40 = vadd.f32 %v843_v8, %v826_v6 }
 0x300   :  { %v849_v41 = vsel %vm848_vm4, %v847_v40, -inf  ;;  %v850_v42 = vmax.f32 %v845_v39, %v846_v29 }
 0x302   :  { %v851_v43 = vmax.f32 %v850_v42, %v849_v41 }
 0x304   :  { %v852_v44 = vrot.slane %v851_v43, 4 }
 0x306   :  { %v853_v45 = vmax.f32 %v851_v43, %v852_v44 }
 0x308   :  { %v854_v46 = vrot.slane %v853_v45, 2 }
 0x30a   :  { %v855_v47 = vmax.f32 %v853_v45, %v854_v46 }
 0x30c   :  { %v856_v48 = vrot.slane %v855_v47, 1 }
 0x30e   :  { %v857_v49 = vmax.f32 %v855_v47, %v856_v48 }
 0x310   :  { %v858_v50 = vsub.f32 %v845_v39, %v857_v49  ;;  %v859_v51 = vsub.f32 %v846_v29, %v857_v49  ;;  %v860_v52 = vsub.f32 %v847_v40, %v857_v49 }
 0x312   :  { %v861_v54 = vmul.f32 1.442695, %v858_v50  ;;  %v863_v55 = vmul.f32 1.442695, %v859_v51  ;;  %v865_v60 = vmul.f32 1.442695, %v860_v52 }
 0x314   :  { %1074 = vpow2.f32 %v861_v54 }
 0x315   :  { %1076 = vpow2.f32 %v863_v55 }
 0x316   :  { %1078 = vpow2.f32 %v865_v60 }
 0x31e   :  { %v1075_v61 = vpop.eup %1074 }
 0x31f   :  { %v1077_v62 = vpop.eup %1076 }
 0x320   :  { %v1079_v0 = vpop.eup %1078  ;;  %v867_v1 = vadd.f32 %v1077_v62, %v1075_v61 }
 0x321   :  { %v868_v2 = vsel %vm848_vm4, %v1079_v0, 0.0 }
 0x322   :  { %v869_v56 = vadd.f32 %v868_v2, %v867_v1 }
 0x324   :  { %v870_v3 = vrot.slane %v869_v56, 4 }
 0x326   :  { %v871_v7 = vadd.f32 %v870_v3, %v869_v56 }
 0x328   :  { %v872_v9 = vrot.slane %v871_v7, 2 }
 0x32a   :  { %v873_v57 = vadd.f32 %v872_v9, %v871_v7 }
 0x32c   :  { %v874_v11 = vrot.slane %v873_v57, 1 }
 0x32e   :  { %v875_v12 = vadd.f32 %v874_v11, %v873_v57 }
 0x330   :  { %1080 = vlog2.f32 %v875_v12 }
 0x33a   :  { %v1081_v13 = vpop.eup %1080 }
 0x33b   :  { %v877_v10 = vmul.f32 0.6931472, %v1081_v13 }
 0x33d   :  { %v878_v15 = vsub.f32 %v858_v50, %v877_v10  ;;  %v879_v16 = vsub.f32 %v859_v51, %v877_v10  ;;  %v880_v18 = vsub.f32 %v860_v52, %v877_v10 }
 0x33f   :  { %881 = vst [vmem:[#allocation2] sm:$0xff] %v878_v15  ;;  %882 = vst [vmem:[#allocation2 + $0x8] sm:$0xff] %v879_v16 }
 0x340   :  { %883 = vst [vmem:[#allocation2 + $0x10] sm:$0xf] %v880_v18 }
 0x341   :  { %1093 = shalt.err (!%p1090_p4)
}
 0x342   :  { %s1094_s29 = scalar_lea.hbm %s1440_s11, 384 }
 0x343   :  { %p1095_p5 = scmp.ne.s32.totalorder %s1440_s11, %s1094_s29  ;;  %p1098_p6 = scmp.lt.u32.totalorder %s1094_s29, %s1440_s11 }
 0x345   :  { %p1100_p7 = pnand %p1098_p6, %p1095_p5 }
 0x347   :  { %1103 = shalt.err (!%p1100_p7)
}
 0x348   :  { %s1125_s13 = smov 128   ;;  %s1126_s1 = smov 8  }
 0x349   :  { %895 = dma.vmem_to_hbm [thread:$0]  %s890_s26, 384, %s1440_s11, [#allocation3], %s1125_s13, %s1125_s13, %s1126_s1  }
 0x34a   :  { %1104 = dma.done.wait [#allocation3], 384  }
 0x34b   :  { %1105 = vsyncadd [#allocation3], 4294966912 }
 0x34c   :  { %899 = vsyncpa [#allocation3], 1 }

</bundles_post_ra>
